<compile_context>
chip_gen: v7x
topology: tpu7x:2x2x1
jax: 0.10.0
libtpu: 0.0.40
codegen_flags: <defaults>
</compile_context>

<pallas_src>
import functools
import math

import jax
import jax.numpy as jnp
from jax.experimental import pallas as pl
from jax.experimental.pallas import tpu as pltpu

_GELU_C = math.sqrt(2.0 / math.pi)
_GELU_K = 0.044715
_MIB = 1024 * 1024


def _gelu_tanh_f32(x):
    # GELU(approximate='tanh') in f32: x*x computed once, tanh on the EUP,
    # cheap tail (caller fuses the final bf16 cast into the same expression).
    x2 = x * x
    t = jnp.tanh(_GELU_C * x * (1.0 + _GELU_K * x2))
    return 0.5 * x * (1.0 + t)


# ---------------------------------------------------------------------------
# Kernels
# ---------------------------------------------------------------------------

def mlp_kernel_resident(x_ref, w1_ref, b1_ref, w2_ref, b2_ref, o_ref):
    # x_ref : (tm, C)    bf16 row tile
    # w1_ref: (C, H)     bf16 c_fc weight (grid-constant, fetched once)
    # b1_ref: (1, H)     f32  c_fc bias
    # w2_ref: (H, C)     bf16 c_proj weight (grid-constant, fetched once)
    # b2_ref: (1, C)     f32  c_proj bias
    # o_ref : (tm, C)    output tile
    h = jnp.dot(x_ref[...], w1_ref[...], preferred_element_type=jnp.float32)
    g = _gelu_tanh_f32(h + b1_ref[...]).astype(w2_ref.dtype)   # fused tail+cast
    y = jnp.dot(g, w2_ref[...], preferred_element_type=jnp.float32)
    o_ref[...] = (y + b2_ref[...]).astype(o_ref.dtype)


def mlp_kernel_tiled(x_ref, w1_ref, b1_ref, w2_ref, b2_ref, o_ref, acc_ref):
    # Hidden-tiled reduction: acc_ref is a (tm, C) f32 VMEM accumulator that is
    # resident across the "arbitrary" hidden axis.
    h_idx = pl.program_id(1)

    @pl.when(h_idx == 0)
    def _init():
        acc_ref[...] = jnp.zeros_like(acc_ref)

    # c_fc slice: (tm, C) @ (C, th) -> (tm, th), f32 accumulate on the MXU.
    h = jnp.dot(x_ref[...], w1_ref[...], preferred_element_type=jnp.float32)
    g = _gelu_tanh_f32(h + b1_ref[...]).astype(w2_ref.dtype)   # fused tail+cast
    # c_proj slice: (tm, th) @ (th, C) accumulated into the f32 scratch.
    acc_ref[...] += jnp.dot(g, w2_ref[...], preferred_element_type=jnp.float32)

    @pl.when(h_idx == pl.num_programs(1) - 1)
    def _finalize():
        # b2 added exactly once; dropout is eval-mode identity.
        o_ref[...] = (acc_ref[...] + b2_ref[...]).astype(o_ref.dtype)


# ---------------------------------------------------------------------------
# Tiling / budget helpers
# ---------------------------------------------------------------------------

def _round_up(x, m):
    return (x + m - 1) // m * m


def _cdiv(a, b):
    return -(-a // b)


def _pad_axis(a, axis, new_size):
    pad = new_size - a.shape[axis]
    if pad == 0:
        return a
    widths = [(0, 0)] * a.ndim
    widths[axis] = (0, pad)
    return jnp.pad(a, widths)


@functools.lru_cache(maxsize=1)
def _vmem_limit_bytes():
    # Generation-aware scoped-VMEM limit: ~3/4 of the per-core VMEM capacity
    # (48 MiB on v7x's 64 MiB/TC, 96 MiB on v5e/v6e's 128 MiB).
    try:
        cap = int(pltpu.get_tpu_info().vmem_capacity_bytes)
    except Exception:
        cap = 64 * _MIB  # conservative fallback (v7x per-TC)
    return max(32 * _MIB, (cap * 3) // 4)


def _pick_row_tile(M, target=1024):
    """Row tile: multiple of 16 (bf16 sublane packing).  Arithmetic intensity
    of the schedule equals tm FLOPs per weight byte, so the default target is
    1024 (clears the v6e roofline).  tm is rebalanced from M to bound padding
    waste, and at least 2 row tiles are created when M is large enough
    (>= 2*384 rows, the v7x roofline floor) so megacore sharding keeps both
    TensorCores busy."""
    m16 = _round_up(max(M, 1), 16)
    n = 1 if m16 <= target else _cdiv(m16, target)
    if n < 2 and m16 >= 2 * 384:
        n = 2
    return _round_up(_cdiv(m16, n), 16)


def _pick_hidden_tile(H, C, tm, budget):
    """Hidden tile for the tiled path: double-buffered bf16 W1/W2 slabs cost
    8*C*th bytes and the (tm, th) f32 GELU temp + bf16 copy cost ~6*tm*th, so
    pick th such that those use about half the budget, preferring exact
    divisors of H that are multiples of 512 (full 2x256 MXU passes), then 256,
    then 128; fall back to zero-padding H."""
    denom = max(8 * C + 6 * tm, 1)
    cap = max(256, (budget // 2) // denom)
    cap = min(cap, H)
    target = max(256, (cap // 256) * 256)
    if H <= target:
        return H
    for step in (512, 256, 128):
        start = (target // step) * step
        for th in range(start, step - 1, -step):
            if th > 0 and H % th == 0:
                return th
    return target  # zero-pad H up to a multiple of this


# ---------------------------------------------------------------------------
# Wrapper
# ---------------------------------------------------------------------------

def mlp_forward(x, w1, b1, w2, b2, *, tile_m=None, tile_h=None,
                compute_dtype=jnp.bfloat16):
    """x: (B, T, C); w1: (C, H) = c_fc.weight^T; b1: (H,);
    w2: (H, C) = c_proj.weight^T; b2: (C,)."""
    B, T, C = x.shape
    H = w1.shape[1]
    M = B * T
    out_dtype = x.dtype
    out_isz = jnp.dtype(out_dtype).itemsize
    cdt = compute_dtype if compute_dtype is not None else x.dtype
    cdt_isz = jnp.dtype(cdt).itemsize

    vmem_limit = _vmem_limit_bytes()

    tm = tile_m if tile_m is not None else _pick_row_tile(M)
    M_pad = _round_up(M, tm)
    n_row_tiles = M_pad // tm

    if tile_h is not None:
        th = tile_h
    else:
        # Weight-resident fast path: both bf16 weights (single-buffered), the
        # (tm, H) f32 GELU temp (+ bf16 copy) and the x/out/bias tiles must fit
        # comfortably inside the per-core VMEM budget.
        resident_bytes = (2 * cdt_isz * C * H            # W1 + W2, single-buffered
                          + 4 * (H + C)                  # biases (f32)
                          + 2 * cdt_isz * tm * C         # x tile, double-buffered
                          + 2 * out_isz * tm * C         # out tile, double-buffered
                          + (4 + cdt_isz) * tm * H)      # f32 GELU temp + bf16 copy
        if resident_bytes <= int(0.85 * vmem_limit):
            th = H
        else:
            th = _pick_hidden_tile(H, C, tm, vmem_limit)

    H_pad = _round_up(H, th)
    resident = (th == H_pad)

    # GEMM operands in bf16 (MXU-native); biases stay f32 (exact adds).
    # (Caller can pre-cast w1/w2 to bf16 once; the casts below then no-op.)
    x2d = _pad_axis(x.reshape(M, C), 0, M_pad).astype(cdt)
    w1_p = _pad_axis(w1, 1, H_pad).astype(cdt)
    w2_p = _pad_axis(w2, 0, H_pad).astype(cdt)
    b1_2d = _pad_axis(b1.reshape(1, H), 1, H_pad).astype(jnp.float32)
    b2_2d = b2.reshape(1, C).astype(jnp.float32)

    # Cost hint: weights are re-streamed once per row tile unless resident.
    w_stream_bytes = (w1_p.size + w2_p.size) * cdt_isz + b1_2d.size * 4
    weight_streams = 1 if resident else n_row_tiles
    bytes_accessed = (x2d.size * cdt_isz
                      + weight_streams * w_stream_bytes
                      + b2_2d.size * 4
                      + M_pad * C * out_isz)
    cost = pl.CostEstimate(
        flops=4 * M_pad * C * H_pad,       # two GEMMs, 2 flops/MAC
        transcendentals=M_pad * H_pad,     # tanh per hidden element
        bytes_accessed=int(bytes_accessed),
    )

    if resident:
        # 1-D grid over row tiles; weights grid-constant (DMA'd once) and
        # single-buffered so the resident footprint is 2*C*H bf16 bytes.
        grid_spec = pltpu.PrefetchScalarGridSpec(
            num_scalar_prefetch=0,
            grid=(n_row_tiles,),
            in_specs=[
                pl.BlockSpec((tm, C), lambda i: (i, 0)),             # x row tile
                pl.BlockSpec((C, H_pad), lambda i: (0, 0),
                             pipeline_mode=pl.Buffered(1)),          # W1 resident
                pl.BlockSpec((1, H_pad), lambda i: (0, 0)),          # b1
                pl.BlockSpec((H_pad, C), lambda i: (0, 0),
                             pipeline_mode=pl.Buffered(1)),          # W2 resident
                pl.BlockSpec((1, C), lambda i: (0, 0)),              # b2
            ],
            out_specs=pl.BlockSpec((tm, C), lambda i: (i, 0)),
        )
        kernel = mlp_kernel_resident
        dim_sem = ("parallel",)
    else:
        grid_spec = pltpu.PrefetchScalarGridSpec(
            num_scalar_prefetch=0,
            grid=(n_row_tiles, H_pad // th),
            in_specs=[
                pl.BlockSpec((tm, C), lambda i, h: (i, 0)),   # x row tile
                pl.BlockSpec((C, th), lambda i, h: (0, h)),   # W1 column slab
                pl.BlockSpec((1, th), lambda i, h: (0, h)),   # b1 slice
                pl.BlockSpec((th, C), lambda i, h: (h, 0)),   # W2 row slab
                pl.BlockSpec((1, C), lambda i, h: (0, 0)),    # b2 (constant)
            ],
            out_specs=pl.BlockSpec((tm, C), lambda i, h: (i, 0)),
            scratch_shapes=[pltpu.VMEM((tm, C), jnp.float32)],
        )
        kernel = mlp_kernel_tiled
        dim_sem = ("parallel", "arbitrary")

    out2d = pl.pallas_call(
        kernel,
        out_shape=jax.ShapeDtypeStruct((M_pad, C), out_dtype),
        grid_spec=grid_spec,
        compiler_params=pltpu.CompilerParams(
            dimension_semantics=dim_sem,
            vmem_limit_bytes=int(vmem_limit),
        ),
        cost_estimate=cost,
    )(x2d, w1_p, b1_2d, w2_p, b2_2d)

    return out2d[:M].reshape(B, T, C)


def reference_mlp(x, w1, b1, w2, b2):
    h = jnp.einsum("btc,ch->bth", x.astype(jnp.float32),
                   w1.astype(jnp.float32)) + b1.astype(jnp.float32)
    h = _gelu_tanh_f32(h)
    y = jnp.einsum("bth,hc->btc", h, w2.astype(jnp.float32)) + b2.astype(jnp.float32)
    return y


if __name__ == "__main__":
    # ---- Case 1: module-sized config (batch=2, seq=8, n_embd=32, H=4*C=128).
    #      Exercises the weight-resident 1-D path.
    B, T, C = 2, 8, 32
    H = 4 * C
    kx, k1, k2 = jax.random.split(jax.random.PRNGKey(0), 3)
    x = jax.random.normal(kx, (B, T, C), dtype=jnp.float32)
    w1 = jax.random.normal(k1, (C, H), dtype=jnp.float32) * 0.02   # c_fc.weight^T
    b1 = jnp.zeros((H,), dtype=jnp.float32)                        # c_fc.bias
    w2 = jax.random.normal(k2, (H, C), dtype=jnp.float32) * 0.02   # c_proj.weight^T
    b2 = jnp.zeros((C,), dtype=jnp.float32)                        # c_proj.bias

    y = jax.block_until_ready(mlp_forward(x, w1, b1, w2, b2))
    y_ref = reference_mlp(x, w1, b1, w2, b2)
    assert y.shape == (B, T, C)
    assert jnp.allclose(y.astype(jnp.float32), y_ref, atol=5e-3, rtol=5e-2), (
        float(jnp.max(jnp.abs(y.astype(jnp.float32) - y_ref))))

    # ---- Case 2: exercise the hidden-tiled 2-D grid, accumulator and padding.
    B2, T2, C2 = 2, 60, 128           # M = 120 (padded to 128), H = 512
    H2 = 4 * C2
    kx2, k3, k4 = jax.random.split(jax.random.PRNGKey(1), 3)
    x2 = jax.random.normal(kx2, (B2, T2, C2), dtype=jnp.float32)
    w1b = jax.random.normal(k3, (C2, H2), dtype=jnp.float32) * 0.02
    b1b = jax.random.normal(jax.random.PRNGKey(2), (H2,), dtype=jnp.float32) * 0.02
    w2b = jax.random.normal(k4, (H2, C2), dtype=jnp.float32) * 0.02
    b2b = jax.random.normal(jax.random.PRNGKey(3), (C2,), dtype=jnp.float32) * 0.02

    y2 = jax.block_until_ready(
        mlp_forward(x2, w1b, b1b, w2b, b2b, tile_m=32, tile_h=128))
    y2_ref = reference_mlp(x2, w1b, b1b, w2b, b2b)
    assert y2.shape == (B2, T2, C2)
    assert jnp.allclose(y2.astype(jnp.float32), y2_ref, atol=5e-3, rtol=5e-2), (
        float(jnp.max(jnp.abs(y2.astype(jnp.float32) - y2_ref))))

    # ---- Case 3: auto-picked resident path with row padding (M = 20 -> 32).
    B3, T3, C3 = 2, 10, 64
    H3 = 4 * C3
    kx3, k5, k6 = jax.random.split(jax.random.PRNGKey(4), 3)
    x3 = jax.random.normal(kx3, (B3, T3, C3), dtype=jnp.float32)
    w1c = jax.random.normal(k5, (C3, H3), dtype=jnp.float32) * 0.02
    b1c = jax.random.normal(jax.random.PRNGKey(5), (H3,), dtype=jnp.float32) * 0.02
    w2c = jax.random.normal(k6, (H3, C3), dtype=jnp.float32) * 0.02
    b2c = jax.random.normal(jax.random.PRNGKey(6), (C3,), dtype=jnp.float32) * 0.02

    y3 = jax.block_until_ready(mlp_forward(x3, w1c, b1c, w2c, b2c))
    y3_ref = reference_mlp(x3, w1c, b1c, w2c, b2c)
    assert y3.shape == (B3, T3, C3)
    assert jnp.allclose(y3.astype(jnp.float32), y3_ref, atol=5e-3, rtol=5e-2), (
        float(jnp.max(jnp.abs(y3.astype(jnp.float32) - y3_ref))))

    print("KERNEL_OK")
</pallas_src>

<mosaic_0001>
module attributes {stable_mosaic.version = 11 : i64} {
  func.func @mlp_kernel_resident(%arg0: i32, %arg1: memref<16x32xbf16, #tpu.memory_space<vmem>>, %arg2: memref<32x128xbf16, #tpu.memory_space<vmem>>, %arg3: memref<1x128xf32, #tpu.memory_space<vmem>>, %arg4: memref<128x32xbf16, #tpu.memory_space<vmem>>, %arg5: memref<1x32xf32, #tpu.memory_space<vmem>>, %arg6: memref<16x32xf32, #tpu.memory_space<vmem>>) attributes {dimension_semantics = [#tpu.dimension_semantics<parallel>], iteration_bounds = array<i64: 1>, scalar_prefetch = 0 : i64, scratch_operands = 0 : i64, tpu.core_type = #tpu.core_type<tc>, window_params = [{transform_indices = @transform_0, window_bounds = array<i64: 16, 32>}, {pipeline_mode = #tpu.pipeline_mode<synchronous>, transform_indices = @transform_1, window_bounds = array<i64: 32, 128>}, {pipeline_mode = #tpu.pipeline_mode<synchronous>, transform_indices = @transform_2, window_bounds = array<i64: 1, 128>}, {pipeline_mode = #tpu.pipeline_mode<synchronous>, transform_indices = @transform_3, window_bounds = array<i64: 128, 32>}, {pipeline_mode = #tpu.pipeline_mode<synchronous>, transform_indices = @transform_4, window_bounds = array<i64: 1, 32>}, {transform_indices = @transform_5, window_bounds = array<i64: 16, 32>}]} {
    %c0 = arith.constant 0 : index
    %c0_0 = arith.constant 0 : index
    %0 = vector.load %arg1[%c0, %c0_0] : memref<16x32xbf16, #tpu.memory_space<vmem>>, vector<16x32xbf16>
    %c0_1 = arith.constant 0 : index
    %c0_2 = arith.constant 0 : index
    %1 = vector.load %arg2[%c0_1, %c0_2] : memref<32x128xbf16, #tpu.memory_space<vmem>>, vector<32x128xbf16>
    %cst = arith.constant dense<0.000000e+00> : vector<16x128xf32>
    %2 = tpu.matmul %0, %1, %cst {dimension_numbers = #tpu.dot_dimension_numbers<[1], [0], [0], [1], [0, 0, 1, 1], [], []>} : vector<16x32xbf16>, vector<32x128xbf16>, vector<16x128xf32> -> vector<16x128xf32>
    %c0_3 = arith.constant 0 : index
    %c0_4 = arith.constant 0 : index
    %3 = vector.load %arg3[%c0_3, %c0_4] : memref<1x128xf32, #tpu.memory_space<vmem>>, vector<1x128xf32>
    %4 = vector.broadcast %3 : vector<1x128xf32> to vector<16x128xf32>
    %5 = arith.addf %2, %4 : vector<16x128xf32>
    %6 = arith.mulf %5, %5 : vector<16x128xf32>
    %cst_5 = arith.constant 0.797884583 : f32
    %7 = vector.broadcast %cst_5 : f32 to vector<16x128xf32>
    %8 = arith.mulf %7, %5 : vector<16x128xf32>
    %cst_6 = arith.constant 4.471500e-02 : f32
    %9 = vector.broadcast %cst_6 : f32 to vector<16x128xf32>
    %10 = arith.mulf %9, %6 : vector<16x128xf32>
    %cst_7 = arith.constant 1.000000e+00 : f32
    %11 = vector.broadcast %cst_7 : f32 to vector<16x128xf32>
    %12 = arith.addf %11, %10 : vector<16x128xf32>
    %13 = arith.mulf %8, %12 : vector<16x128xf32>
    %14 = math.tanh %13 : vector<16x128xf32>
    %cst_8 = arith.constant 5.000000e-01 : f32
    %15 = vector.broadcast %cst_8 : f32 to vector<16x128xf32>
    %16 = arith.mulf %15, %5 : vector<16x128xf32>
    %cst_9 = arith.constant 1.000000e+00 : f32
    %17 = vector.broadcast %cst_9 : f32 to vector<16x128xf32>
    %18 = arith.addf %17, %14 : vector<16x128xf32>
    %19 = arith.mulf %16, %18 : vector<16x128xf32>
    %20 = arith.truncf %19 : vector<16x128xf32> to vector<16x128xbf16>
    %c0_10 = arith.constant 0 : index
    %c0_11 = arith.constant 0 : index
    %21 = vector.load %arg4[%c0_10, %c0_11] : memref<128x32xbf16, #tpu.memory_space<vmem>>, vector<128x32xbf16>
    %cst_12 = arith.constant dense<0.000000e+00> : vector<16x32xf32>
    %22 = tpu.matmul %20, %21, %cst_12 {dimension_numbers = #tpu.dot_dimension_numbers<[1], [0], [0], [1], [0, 0, 1, 1], [], []>} : vector<16x128xbf16>, vector<128x32xbf16>, vector<16x32xf32> -> vector<16x32xf32>
    %c0_13 = arith.constant 0 : index
    %c0_14 = arith.constant 0 : index
    %23 = vector.load %arg5[%c0_13, %c0_14] : memref<1x32xf32, #tpu.memory_space<vmem>>, vector<1x32xf32>
    %24 = vector.broadcast %23 : vector<1x32xf32> to vector<16x32xf32>
    %25 = arith.addf %22, %24 : vector<16x32xf32>
    %c0_15 = arith.constant 0 : index
    %c0_16 = arith.constant 0 : index
    %26 = vector.load %arg6[%c0_15, %c0_16] : memref<16x32xf32, #tpu.memory_space<vmem>>, vector<16x32xf32>
    tpu.vector_store %arg6[%c0_15, %c0_16], %25 {strides = array<i32>} : memref<16x32xf32, #tpu.memory_space<vmem>>, vector<16x32xf32>,
    return
  }
  func.func @transform_0(%arg0: i32) -> (i32, i32) {
    %c0_i32 = arith.constant 0 : i32
    %c0_i32_0 = arith.constant 0 : i32
    return %arg0, %c0_i32 : i32, i32
  }
  func.func @transform_1(%arg0: i32) -> (i32, i32) {
    %c0_i32 = arith.constant 0 : i32
    %c0_i32_0 = arith.constant 0 : i32
    %c0_i32_1 = arith.constant 0 : i32
    return %c0_i32, %c0_i32_0 : i32, i32
  }
  func.func @transform_2(%arg0: i32) -> (i32, i32) {
    %c0_i32 = arith.constant 0 : i32
    %c0_i32_0 = arith.constant 0 : i32
    %c0_i32_1 = arith.constant 0 : i32
    return %c0_i32, %c0_i32_0 : i32, i32
  }
  func.func @transform_3(%arg0: i32) -> (i32, i32) {
    %c0_i32 = arith.constant 0 : i32
    %c0_i32_0 = arith.constant 0 : i32
    %c0_i32_1 = arith.constant 0 : i32
    return %c0_i32, %c0_i32_0 : i32, i32
  }
  func.func @transform_4(%arg0: i32) -> (i32, i32) {
    %c0_i32 = arith.constant 0 : i32
    %c0_i32_0 = arith.constant 0 : i32
    %c0_i32_1 = arith.constant 0 : i32
    return %c0_i32, %c0_i32_0 : i32, i32
  }
  func.func @transform_5(%arg0: i32) -> (i32, i32) {
    %c0_i32 = arith.constant 0 : i32
    %c0_i32_0 = arith.constant 0 : i32
    return %arg0, %c0_i32 : i32, i32
  }
}

</mosaic_0001>

<bundles_post_ra>
// kernel: tpu_custom_call.1
= control target key start
LH: loop header
LB: loop body
LE: loop exit
PB: predicated region body
PF: predicated region fallthrough
CT: control target
= control target key end

     0   :  { %v344_v1 = vmov 0.0   ;;  %vm345_vm0 = vmmov 0   ;;  %vm52_vm1 = vcmask 261120   ;;  %s433_s0 = inlined_call_operand.vmem [shape: bf16[16,32], index: 0, kind: input, shape index: {}]   ;;  %s434_s1 = inlined_call_operand.vmem [shape: bf16[32,128], index: 1, kind: input, shape index: {}]   ;;  %s435_s2 = inlined_call_operand.vmem [shape: f32[1,128], index: 2, kind: input, shape index: {}]   ;;  %s436_s3 = inlined_call_operand.vmem [shape: bf16[128,32], index: 3, kind: input, shape index: {}]   ;;  %s437_s4 = inlined_call_operand.vmem [shape: f32[1,32], index: 4, kind: input, shape index: {}]   ;;  %s438_s5 = inlined_call_operand.hbm [shape: f32[16,32], index: 5, kind: output, shape index: {}]  }
   0x1   :  { %v305_v0 = vld [vmem:[%s434_s1] sm:$0xff]   ;;  %272 = vmatprep.subr.bf16.mxu0 %v344_v1  ;;  %280 = vmatprep.subr.bf16.mxu1 %v344_v1  ;;  %v306_v2 = vld [vmem:[%s434_s1 + $0x8] sm:$0xff]  }
   0x2   :  { %273 = vmatpush3.bf16.msra.mxu0 %v305_v0  ;;  %276 = vmatprep.mubr.msk.bf16.mxu0 %vm345_vm0, %v344_v1  ;;  %v308_v3 = vld [vmem:[%s436_s3] sm:$0xff]  }
   0x3   :  { %274 = vmatprep.subr.bf16.mxu0 %v344_v1  ;;  %296 = vmatprep.mubr.msk.bf16.mxu1 %vm345_vm0, %v344_v1  ;;  %v307_v4 = vld [vmem:[%s433_s0] sm:$0xff]  }
   0x4   :  { %281 = vmatpush3.bf16.msra.mxu1 %v308_v3 }
   0x5   :  { %282 = vmatprep.subr.bf16.mxu1 %v344_v1 }
   0x6   :  { %275 = vmatpush3.bf16.msra.mxu0 %v306_v2 }
   0x9   :  { %277 = vmatmul.mubr.msk.bf16.vlgmr.msra.gmra.mrb[0].mxu0 %vm52_vm1, %v307_v4 }
   0xa   :  { %10 = vsyncpa [#allocation3], 0  ;;  %v309_v5 = vld [vmem:[%s436_s3 + $0x8] sm:$0xff]   ;;  %v310_v6 = vld [vmem:[%s436_s3 + $0x10] sm:$0xff]   ;;  %s346_s15 = smov [#allocation2]  }
   0xb   :  { %283 = vmatpush3.bf16.msra.mxu1 %v309_v5  ;;  %v311_v7 = vld [vmem:[%s436_s3 + $0x18] sm:$0xff]   ;;  %v312_v8 = vld [vmem:[%s436_s3 + $0x20] sm:$0xff]   ;;  %v313_v9 = vld [vmem:[%s436_s3 + $0x28] sm:$0xff]   ;;  %s235_s16 = sshll.u32 %s346_s15, 4  ;;  %s236_s16 = int_to_ptr.vmem [resolvable:$true] %s235_s16 }
   0xc   :  { %284 = vmatprep.subr.bf16.mxu1 %v344_v1  ;;  %v314_v10 = vld [vmem:[%s436_s3 + $0x30] sm:$0xff]   ;;  %v315_v11 = vld [vmem:[%s436_s3 + $0x38] sm:$0xff]   ;;  %v246_v12 = vld [vmem:[%s435_s2] ss:$0 sm:$0xff]  ;;  %s320_s17 = scalar_lea.vmem %s236_s16, 256  ;;  %p325_p1 = scmp.lt.s32.totalorder %s236_s16, %s236_s16 }
   0xd   :  { %v251_v38 = vld [vmem:[%s437_s4] ss:$0 sm:$0xff]  ;;  %p321_p0 = scmp.ne.s32.totalorder %s236_s16, %s320_s17  ;;  %p326_p2 = scmp.lt.s32.totalorder %s320_s17, %s320_s17 }
   0xf   :  { %285 = vmatpush3.bf16.msra.mxu1 %v310_v6  ;;  %p327_p3 = por %p326_p2, %p325_p1 }
  0x10   :  { %286 = vmatprep.subr.bf16.mxu1 %v344_v1 }
  0x11   :  { %p328_p4 = pnand %p327_p3, %p321_p0 }
  0x13   :  { %287 = vmatpush3.bf16.msra.mxu1 %v311_v7 }
  0x14   :  { %288 = vmatprep.subr.bf16.mxu1 %v344_v1 }
  0x17   :  { %289 = vmatpush3.bf16.msra.mxu1 %v312_v8 }
  0x18   :  { %290 = vmatprep.subr.bf16.mxu1 %v344_v1 }
  0x1b   :  { %291 = vmatpush3.bf16.msra.mxu1 %v313_v9 }
  0x1c   :  { %292 = vmatprep.subr.bf16.mxu1 %v344_v1 }
  0x1f   :  { %293 = vmatpush3.bf16.msra.mxu1 %v314_v10 }
  0x20   :  { %294 = vmatprep.subr.bf16.mxu1 %v344_v1 }
  0x23   :  { %295 = vmatpush3.bf16.msra.mxu1 %v315_v11 }
  0xdc   :  { %v90_v13 = vpop.f32.mrb[0].mxu0 }
  0xdd   :  { %v91_v14 = vadd.f32 %v246_v12, %v90_v13  ;;  %v278_v15 = vpop.f32.mrb[1].mxu0 }
  0xde   :  { %v93_v16 = vpop.f32.mrb[2].mxu0 }
  0xdf   :  { %v97_v17 = vmul.f32 %v91_v14, %v91_v14  ;;  %v94_v18 = vadd.f32 %v246_v12, %v93_v16  ;;  %v279_v19 = vpop.f32.mrb[3].mxu0  ;;  %v99_v22 = vmul.f32 0.7978846, %v91_v14  ;;  %v109_v32 = vmul.f32 0.5, %v91_v14 }
  0xe1   :  { %v101_v20 = vmul.f32 0.044715, %v97_v17  ;;  %v98_v21 = vmul.f32 %v94_v18, %v94_v18  ;;  %v100_v26 = vmul.f32 0.7978846, %v94_v18  ;;  %v110_v33 = vmul.f32 0.5, %v94_v18 }
  0xe3   :  { %v103_v23 = vadd.f32 1.0, %v101_v20  ;;  %v102_v24 = vmul.f32 0.044715, %v98_v21 }
  0xe5   :  { %v105_v25 = vmul.f32 %v103_v23, %v99_v22  ;;  %v104_v27 = vadd.f32 1.0, %v102_v24 }
  0xe7   :  { %316 = vtanh.f32 %v105_v25  ;;  %v106_v28 = vmul.f32 %v104_v27, %v100_v26 }
  0xe9   :  { %318 = vtanh.f32 %v106_v28 }
  0xf1   :  { %v317_v29 = vpop.eup %316 }
  0xf2   :  { %v111_v30 = vadd.f32 1.0, %v317_v29 }
  0xf3   :  { %v319_v31 = vpop.eup %318 }
  0xf4   :  { %v112_v34 = vadd.f32 1.0, %v319_v31  ;;  %v113_v35 = vmul.f32 %v111_v30, %v109_v32 }
  0xf6   :  { %v114_v36 = vmul.f32 %v112_v34, %v110_v33 }
  0xf8   :  { %v115_v37 = vpack.c.bf16 %v114_v36, %v113_v35 }
  0xfa   :  { %297 = vmatmul.mubr.bf16.vlgmr.msra.gmra.mrb[0].mxu1 %v115_v37 }
 0x1cd   :  { %v221_v39 = vpop.f32.mrb[0].mxu1 }
 0x1ce   :  { %v222_v40 = vadd.f32 %v251_v38, %v221_v39  ;;  %v298_v41 = vpop.f32.mrb[1].mxu1 }
 0x1cf   :  { %v224_v42 = vpop.f32.mrb[2].mxu1 }
 0x1d0   :  { %228 = vst.msk [vmem:[#allocation2] sm:$0xff] %vm52_vm1, %v222_v40  ;;  %v225_v43 = vadd.f32 %v251_v38, %v224_v42  ;;  %v299_v44 = vpop.f32.mrb[3].mxu1 }
 0x1d2   :  { %229 = vst.msk [vmem:[#allocation2 + $0x8] sm:$0xff] %vm52_vm1, %v225_v43 }
 0x1d3   :  { %331 = shalt.err (!%p328_p4)
}
 0x1d4   :  { %s332_s19 = scalar_lea.hbm %s438_s5, 256 }
 0x1d5   :  { %p333_p5 = scmp.ne.s32.totalorder %s438_s5, %s332_s19  ;;  %p336_p6 = scmp.lt.u32.totalorder %s332_s19, %s438_s5 }
 0x1d7   :  { %p338_p7 = pnand %p336_p6, %p333_p5 }
 0x1d9   :  { %341 = shalt.err (!%p338_p7)
}
 0x1da   :  { %s347_s24 = smov 128   ;;  %s348_s25 = smov 8  }
 0x1db   :  { %241 = dma.vmem_to_hbm [thread:$0]  %s236_s16, 256, %s438_s5, [#allocation3], %s347_s24, %s347_s24, %s348_s25  }
 0x1dc   :  { %342 = dma.done.wait [#allocation3], 256  }
 0x1dd   :  { %343 = vsyncadd [#allocation3], 4294967040 }
 0x1de   :  { %245 = vsyncpa [#allocation3], 1 }

</bundles_post_ra>
